<compile_context>
chip_gen: v7x
topology: tpu7x:2x2x1
jax: 0.10.0
libtpu: 0.0.40
codegen_flags: <defaults>
</compile_context>

<pallas_src>
import jax
import jax.numpy as jnp
from jax.experimental import pallas as pl
from jax.experimental.pallas import tpu as pltpu

EPS = 1e-5  # nn.InstanceNorm2d default eps, affine=False, biased variance


def _fold_quadrant_stats(s1, s2, cout, n_elems):
    """Fold per-(quadrant, channel) row sums into per-channel mean / inv-std."""
    sum1 = s1[0:cout] + s1[cout:2 * cout] + s1[2 * cout:3 * cout] + s1[3 * cout:4 * cout]
    sum2 = s2[0:cout] + s2[cout:2 * cout] + s2[2 * cout:3 * cout] + s2[3 * cout:4 * cout]
    mean_c = sum1 / n_elems                                      # (Cout, 1)
    var_c = jnp.maximum(sum2 / n_elems - mean_c * mean_c, 0.0)   # biased var, clamped
    inv_c = jax.lax.rsqrt(var_c + EPS)
    mean_r = jnp.concatenate([mean_c, mean_c, mean_c, mean_c], axis=0)  # (4*Cout, 1)
    inv_r = jnp.concatenate([inv_c, inv_c, inv_c, inv_c], axis=0)
    return mean_r, inv_r


def unet_up_onepass_kernel(x_ref, w_ref, o_ref):
    # x_ref: (1, Cin, HW) bf16   w_ref: (4*Cout, Cin) bf16   o_ref: (1, 4*Cout, HW) f32
    c4 = o_ref.shape[1]
    hw = o_ref.shape[2]
    cout = c4 // 4

    # MXU: (4*Cout, Cin) @ (Cin, HW) -> (4*Cout, HW); HW is lane-dense.
    y = jnp.dot(w_ref[...], x_ref[0], preferred_element_type=jnp.float32)

    s1 = jnp.sum(y, axis=1, keepdims=True)        # (4*Cout, 1)
    s2 = jnp.sum(y * y, axis=1, keepdims=True)
    mean_r, inv_r = _fold_quadrant_stats(s1, s2, cout, 4.0 * hw)
    o_ref[0] = jnp.maximum((y - mean_r) * inv_r, 0.0)            # ReLU
    # TODO(synk): dropout>0 (training-mode nn.Dropout) not implemented; module default dropout=0.0


def unet_up_twophase_kernel(x_ref, w_ref, o_ref, s1_ref, s2_ref):
    # x_ref: (1, Cin, HW_T) bf16   w_ref: (4*Cout, Cin) bf16
    # o_ref: (1, 4*Cout, HW_T) f32
    # s1_ref/s2_ref: (4*Cout, 1) f32 scratch (per-row running sums)
    phase = pl.program_id(1)
    t = pl.program_id(2)

    c4 = o_ref.shape[1]
    hw_t = o_ref.shape[2]
    cout = c4 // 4

    y = jnp.dot(w_ref[...], x_ref[0], preferred_element_type=jnp.float32)

    @pl.when(jnp.logical_and(phase == 0, t == 0))
    def _():
        s1_ref[...] = jnp.zeros_like(s1_ref)
        s2_ref[...] = jnp.zeros_like(s2_ref)

    @pl.when(phase == 0)
    def _():
        # per-row (quadrant, channel) partial sums across this HW tile
        s1_ref[...] += jnp.sum(y, axis=1, keepdims=True)
        s2_ref[...] += jnp.sum(y * y, axis=1, keepdims=True)

    @pl.when(phase == 1)
    def _():
        n_elems = 4.0 * hw_t * pl.num_programs(2)  # (2H)*(2W) per (n, c)
        mean_r, inv_r = _fold_quadrant_stats(s1_ref[...], s2_ref[...], cout, n_elems)
        o_ref[0] = jnp.maximum((y - mean_r) * inv_r, 0.0)        # ReLU


def _pick_hw_tile(hw, max_tile):
    # Largest multiple-of-128 tile <= max_tile that divides HW, else full HW
    # (block last-dim must be a multiple of 128 or equal the full extent).
    if hw % 128 != 0 or hw <= max_tile:
        return hw
    t = max_tile - (max_tile % 128)
    while t >= 128:
        if hw % t == 0:
            return t
        t -= 128
    return hw


def unet_up(x, skip, style, weight, bias, *, max_hw_tile=None,
            vmem_budget_bytes=16 * 1024 * 1024):
    # x: (N, Cin, H, W), weight: (Cin, Cout, 2, 2), bias: (Cout,)
    # skip: (N, Cs, 2H, 2W), style: (N, Cst, 2H, 2W)
    N, Cin, H, W = x.shape
    Cout = weight.shape[1]
    HW = H * W

    # bias is intentionally unused: a per-channel bias before InstanceNorm2d
    # (affine=False) cancels exactly (it only shifts the per-(n,c) mean).
    del bias

    # NCHW -> (N, Cin, HW): HW becomes the lane axis; no transpose needed.
    x_k = x.reshape(N, Cin, HW).astype(jnp.bfloat16)
    # weight[cin, cout, dh, dw] -> (4*Cout, Cin), row = (dh*2+dw)*Cout + cout
    w_k = jnp.transpose(weight, (2, 3, 1, 0)).reshape(4 * Cout, Cin).astype(jnp.bfloat16)

    if max_hw_tile is None:
        # live VMEM bytes per HW column: double-buffered bf16 x block +
        # double-buffered f32 out block + f32 y intermediate.
        per_col = 2 * Cin * 2 + 2 * (4 * Cout) * 4 + (4 * Cout) * 4
        max_hw_tile = max(vmem_budget_bytes // per_col, 512)

    HW_T = _pick_hw_tile(HW, max_hw_tile)
    assert HW % HW_T == 0
    T = HW // HW_T

    if T == 1:
        # Single pass: whole per-sample slab resident -> x read once, one matmul.
        y = pl.pallas_call(
            unet_up_onepass_kernel,
            out_shape=jax.ShapeDtypeStruct((N, 4 * Cout, HW), jnp.float32),
            grid_spec=pltpu.PrefetchScalarGridSpec(
                num_scalar_prefetch=0,
                grid=(N,),
                in_specs=[
                    pl.BlockSpec((1, Cin, HW), lambda n: (n, 0, 0)),
                    pl.BlockSpec((4 * Cout, Cin), lambda n: (0, 0)),  # weight resident
                ],
                out_specs=pl.BlockSpec((1, 4 * Cout, HW), lambda n: (n, 0, 0)),
            ),
            compiler_params=pltpu.CompilerParams(
                dimension_semantics=("parallel",),
                vmem_limit_bytes=64 * 1024 * 1024,
            ),
        )(x_k, w_k)
    else:
        # Two-phase tiled path for large HW: phase 0 = stats, phase 1 = normalize.
        y = pl.pallas_call(
            unet_up_twophase_kernel,
            out_shape=jax.ShapeDtypeStruct((N, 4 * Cout, HW), jnp.float32),
            grid_spec=pltpu.PrefetchScalarGridSpec(
                num_scalar_prefetch=0,
                grid=(N, 2, T),  # (sample, phase {stats, normalize}, hw tile)
                in_specs=[
                    pl.BlockSpec((1, Cin, HW_T), lambda n, p, t: (n, 0, t)),
                    pl.BlockSpec((4 * Cout, Cin), lambda n, p, t: (0, 0)),  # resident
                ],
                # During phase 0 all steps alias output tile 0 (never written), so
                # each output block is written back to HBM exactly once (phase-1 data).
                out_specs=pl.BlockSpec((1, 4 * Cout, HW_T), lambda n, p, t: (n, 0, t * p)),
                scratch_shapes=[
                    pltpu.VMEM((4 * Cout, 1), jnp.float32),  # sum(y) per row
                    pltpu.VMEM((4 * Cout, 1), jnp.float32),  # sum(y^2) per row
                ],
            ),
            compiler_params=pltpu.CompilerParams(
                dimension_semantics=("parallel", "arbitrary", "arbitrary"),
                vmem_limit_bytes=64 * 1024 * 1024,
            ),
        )(x_k, w_k)

    # scatter the 2x2 quadrants back to NCHW: (N, 4*Cout, HW) -> (N, Cout, 2H, 2W)
    y = y.reshape(N, 2, 2, Cout, H, W)           # (n, dh, dw, c, h, w)
    y = jnp.transpose(y, (0, 3, 4, 1, 5, 2))     # (n, c, h, dh, w, dw)
    y = y.reshape(N, Cout, 2 * H, 2 * W)

    return jnp.concatenate([y, skip, style], axis=1)


def unet_up_reference(x, skip, style, weight, bias):
    # Independent pure-JAX (full f32, with bias) reference for PyTorch semantics.
    N, Cin, H, W = x.shape
    Cout = weight.shape[1]
    # deconv k=2,s=2: out[n, o, 2h+dh, 2w+dw] = sum_c x[n,c,h,w] * W[c,o,dh,dw] + b[o]
    y = jnp.einsum('nchw,codk->nohdwk', x, weight)      # (N, Cout, H, 2, W, 2)
    y = y.reshape(N, Cout, 2 * H, 2 * W) + bias[None, :, None, None]
    mean = jnp.mean(y, axis=(2, 3), keepdims=True)
    var = jnp.mean((y - mean) ** 2, axis=(2, 3), keepdims=True)
    y = (y - mean) * jax.lax.rsqrt(var + EPS)
    y = jnp.maximum(y, 0.0)
    return jnp.concatenate([y, skip, style], axis=1)


if __name__ == "__main__":
    key = jax.random.PRNGKey(0)
    kx, ks, kst, kw, kb = jax.random.split(key, 5)

    N, Cin, Cout, H, W = 2, 8, 4, 16, 16
    Cs, Cst = 4, 3

    x = jax.random.normal(kx, (N, Cin, H, W), jnp.float32)
    skip = jax.random.normal(ks, (N, Cs, 2 * H, 2 * W), jnp.float32)
    style = jax.random.normal(kst, (N, Cst, 2 * H, 2 * W), jnp.float32)
    # deterministic parameter init (synthetic, not a checkpoint load)
    weight = jax.random.normal(kw, (Cin, Cout, 2, 2), jnp.float32) * 0.1
    bias = jax.random.normal(kb, (Cout,), jnp.float32) * 0.1

    ref = jax.block_until_ready(unet_up_reference(x, skip, style, weight, bias))

    # Path 1: one-pass kernel (whole HW=256 slab resident per sample).
    out1 = jax.block_until_ready(unet_up(x, skip, style, weight, bias))
    # Path 2: two-phase tiled kernel (force HW=256 into 2 tiles of 128).
    out2 = jax.block_until_ready(unet_up(x, skip, style, weight, bias, max_hw_tile=128))

    assert out1.shape == (N, Cout + Cs + Cst, 2 * H, 2 * W), out1.shape
    assert out2.shape == (N, Cout + Cs + Cst, 2 * H, 2 * W), out2.shape
    # Tolerance accounts for bf16 matmul inputs (f32 accumulation/stats) and the
    # exact cancellation of the dropped bias under InstanceNorm.
    assert jnp.allclose(out1, ref, atol=2e-2, rtol=2e-2), float(jnp.max(jnp.abs(out1 - ref)))
    assert jnp.allclose(out2, ref, atol=2e-2, rtol=2e-2), float(jnp.max(jnp.abs(out2 - ref)))
    print("KERNEL_OK")
</pallas_src>

<mosaic_0001>
module attributes {stable_mosaic.version = 11 : i64} {
  func.func @unet_up_onepass_kernel(%arg0: i32, %arg1: memref<1x8x256xbf16, #tpu.memory_space<vmem>>, %arg2: memref<16x8xbf16, #tpu.memory_space<vmem>>, %arg3: memref<1x16x256xf32, #tpu.memory_space<vmem>>) attributes {dimension_semantics = [#tpu.dimension_semantics<parallel>], iteration_bounds = array<i64: 2>, scalar_prefetch = 0 : i64, scratch_operands = 0 : i64, tpu.core_type = #tpu.core_type<tc>, window_params = [{transform_indices = @transform_0, window_bounds = array<i64: 1, 8, 256>}, {pipeline_mode = #tpu.pipeline_mode<synchronous>, transform_indices = @transform_1, window_bounds = array<i64: 16, 8>}, {transform_indices = @transform_2, window_bounds = array<i64: 1, 16, 256>}]} {
    %c0 = arith.constant 0 : index
    %c0_0 = arith.constant 0 : index
    %0 = vector.load %arg2[%c0, %c0_0] : memref<16x8xbf16, #tpu.memory_space<vmem>>, vector<16x8xbf16>
    %c0_1 = arith.constant 0 : index
    %c0_2 = arith.constant 0 : index
    %c0_3 = arith.constant 0 : index
    %1 = vector.load %arg1[%c0_1, %c0_2, %c0_3] : memref<1x8x256xbf16, #tpu.memory_space<vmem>>, vector<1x8x256xbf16>
    %2 = vector.shape_cast %1 : vector<1x8x256xbf16> to vector<8x256xbf16>
    %cst = arith.constant dense<0.000000e+00> : vector<16x256xf32>
    %3 = tpu.matmul %0, %2, %cst {dimension_numbers = #tpu.dot_dimension_numbers<[1], [0], [0], [1], [0, 0, 1, 1], [], []>} : vector<16x8xbf16>, vector<8x256xbf16>, vector<16x256xf32> -> vector<16x256xf32>
    %cst_4 = arith.constant dense<0.000000e+00> : vector<16xf32>
    %4 = vector.multi_reduction <add>, %3, %cst_4 [1] : vector<16x256xf32> to vector<16xf32>
    %5 = vector.shape_cast %4 : vector<16xf32> to vector<16x1xf32>
    %6 = arith.mulf %3, %3 : vector<16x256xf32>
    %cst_5 = arith.constant dense<0.000000e+00> : vector<16xf32>
    %7 = vector.multi_reduction <add>, %6, %cst_5 [1] : vector<16x256xf32> to vector<16xf32>
    %8 = vector.shape_cast %7 : vector<16xf32> to vector<16x1xf32>
    %9 = vector.extract_strided_slice %5 {offsets = [0, 0], sizes = [4, 1], strides = [1, 1]} : vector<16x1xf32> to vector<4x1xf32>
    %10 = vector.extract_strided_slice %5 {offsets = [4, 0], sizes = [4, 1], strides = [1, 1]} : vector<16x1xf32> to vector<4x1xf32>
    %11 = arith.addf %9, %10 : vector<4x1xf32>
    %12 = vector.extract_strided_slice %5 {offsets = [8, 0], sizes = [4, 1], strides = [1, 1]} : vector<16x1xf32> to vector<4x1xf32>
    %13 = arith.addf %11, %12 : vector<4x1xf32>
    %14 = vector.extract_strided_slice %5 {offsets = [12, 0], sizes = [4, 1], strides = [1, 1]} : vector<16x1xf32> to vector<4x1xf32>
    %15 = arith.addf %13, %14 : vector<4x1xf32>
    %16 = vector.extract_strided_slice %8 {offsets = [0, 0], sizes = [4, 1], strides = [1, 1]} : vector<16x1xf32> to vector<4x1xf32>
    %17 = vector.extract_strided_slice %8 {offsets = [4, 0], sizes = [4, 1], strides = [1, 1]} : vector<16x1xf32> to vector<4x1xf32>
    %18 = arith.addf %16, %17 : vector<4x1xf32>
    %19 = vector.extract_strided_slice %8 {offsets = [8, 0], sizes = [4, 1], strides = [1, 1]} : vector<16x1xf32> to vector<4x1xf32>
    %20 = arith.addf %18, %19 : vector<4x1xf32>
    %21 = vector.extract_strided_slice %8 {offsets = [12, 0], sizes = [4, 1], strides = [1, 1]} : vector<16x1xf32> to vector<4x1xf32>
    %22 = arith.addf %20, %21 : vector<4x1xf32>
    %cst_6 = arith.constant 1.024000e+03 : f32
    %23 = vector.broadcast %cst_6 : f32 to vector<4x1xf32>
    %24 = arith.divf %15, %23 : vector<4x1xf32>
    %cst_7 = arith.constant 1.024000e+03 : f32
    %25 = vector.broadcast %cst_7 : f32 to vector<4x1xf32>
    %26 = arith.divf %22, %25 : vector<4x1xf32>
    %27 = arith.mulf %24, %24 : vector<4x1xf32>
    %28 = arith.subf %26, %27 : vector<4x1xf32>
    %cst_8 = arith.constant 0.000000e+00 : f32
    %29 = vector.broadcast %cst_8 : f32 to vector<4x1xf32>
    %30 = arith.maximumf %28, %29 : vector<4x1xf32>
    %cst_9 = arith.constant 9.99999974E-6 : f32
    %31 = vector.broadcast %cst_9 : f32 to vector<4x1xf32>
    %32 = arith.addf %30, %31 : vector<4x1xf32>
    %33 = math.rsqrt %32 : vector<4x1xf32>
    %34 = tpu.concatenate %24, %24, %24, %24 in 0 : vector<4x1xf32>, vector<4x1xf32>, vector<4x1xf32>, vector<4x1xf32> -> vector<16x1xf32>
    %35 = tpu.concatenate %33, %33, %33, %33 in 0 : vector<4x1xf32>, vector<4x1xf32>, vector<4x1xf32>, vector<4x1xf32> -> vector<16x1xf32>
    %36 = vector.broadcast %34 : vector<16x1xf32> to vector<16x256xf32>
    %37 = arith.subf %3, %36 : vector<16x256xf32>
    %38 = vector.broadcast %35 : vector<16x1xf32> to vector<16x256xf32>
    %39 = arith.mulf %37, %38 : vector<16x256xf32>
    %cst_10 = arith.constant 0.000000e+00 : f32
    %40 = vector.broadcast %cst_10 : f32 to vector<16x256xf32>
    %41 = arith.maximumf %39, %40 : vector<16x256xf32>
    %c0_11 = arith.constant 0 : index
    %c0_12 = arith.constant 0 : index
    %c0_13 = arith.constant 0 : index
    %42 = vector.load %arg3[%c0_11, %c0_12, %c0_13] : memref<1x16x256xf32, #tpu.memory_space<vmem>>, vector<1x16x256xf32>
    %43 = vector.shape_cast %42 : vector<1x16x256xf32> to vector<16x256xf32>
    %44 = vector.shape_cast %41 : vector<16x256xf32> to vector<1x16x256xf32>
    tpu.vector_store %arg3[%c0_11, %c0_12, %c0_13], %44 {strides = array<i32>} : memref<1x16x256xf32, #tpu.memory_space<vmem>>, vector<1x16x256xf32>,
    return
  }
  func.func @transform_0(%arg0: i32) -> (i32, i32, i32) {
    %c0_i32 = arith.constant 0 : i32
    %c0_i32_0 = arith.constant 0 : i32
    %c0_i32_1 = arith.constant 0 : i32
    return %arg0, %c0_i32, %c0_i32_0 : i32, i32, i32
  }
  func.func @transform_1(%arg0: i32) -> (i32, i32) {
    %c0_i32 = arith.constant 0 : i32
    %c0_i32_0 = arith.constant 0 : i32
    %c0_i32_1 = arith.constant 0 : i32
    return %c0_i32, %c0_i32_0 : i32, i32
  }
  func.func @transform_2(%arg0: i32) -> (i32, i32, i32) {
    %c0_i32 = arith.constant 0 : i32
    %c0_i32_0 = arith.constant 0 : i32
    %c0_i32_1 = arith.constant 0 : i32
    return %arg0, %c0_i32, %c0_i32_0 : i32, i32, i32
  }
}

</mosaic_0001>

<bundles_post_ra>
// kernel: tpu_custom_call.1
= control target key start
LH: loop header
LB: loop body
LE: loop exit
PB: predicated region body
PF: predicated region fallthrough
CT: control target
= control target key end

     0   :  { %7 = vsyncpa [#allocation3], 0  ;;  %s864_s0 = inlined_call_operand.hbm [shape: bf16[2,8,256], index: 0, kind: input, shape index: {}]   ;;  %s865_s1 = inlined_call_operand.hbm [shape: bf16[16,8], index: 1, kind: input, shape index: {}]   ;;  %s866_s2 = inlined_call_operand.hbm [shape: f32[2,16,256], index: 2, kind: output, shape index: {}]  }
   0x1   :  { %9 = vsyncpa [#allocation3 + $0x1], 0 }
   0x2   :  { %10 = vsyncpa [#allocation6], 0 }
   0x3   :  { %11 = vsyncpa [#allocation4], 0 }
   0x4   :  { %13 = vsyncpa [#allocation4 + $0x1], 0  ;;  %s661_s9 = smov 0   ;;  %s663_s10 = smov 0  }
   0x5   :  { %s665_s11 = smov 0   ;;  %s667_s12 = smov 0  }
   0x6 LB: > { %s682_s13 = sadd.s32 4294967295, %s636_s12   ;;  %s416_s14 = sadd.s32 4294967294, %s636_s12   ;;  %s636_s12 = sphi %s667_s12, %s886_s12   ;;  %s632_s11 = sphi %s665_s11, %s885_s11   ;;  %s628_s10 = sphi %s663_s10, %s884_s10   ;;  %s624_s9 = sphi %s661_s9, %s883_s9  }
   0x7   : > { %p39_p0 = scmp.ne.s32.totalorder %s628_s10, %s624_s9  ;;  %p867_p1 = scmp.eq.s32.totalorder %s682_s13, 0 }
   0x8   : > { %p90_p3 = scmp.eq.s32.totalorder %s416_s14, 1  ;;  %p417_p5 = scmp.ge.s32.totalorder %s636_s12, 1 }
   0x9   : > { %p691_p4 = por %p867_p1, %p39_p0  ;;  %p97_p7 = scmp.lt.s32.totalorder %s636_s12, 3 }
   0xa   : > { %p696_p6 = por %p90_p3, %p39_p0  ;;  %s638_s18 = smov [#allocation5]  }
   0xb   : > { %s870_s15 = scalar_select %p691_p4, 1, 0 }
   0xc   : > { %s871_s16 = scalar_select %p696_p6, 1, 0 }
   0xd   : > { %p701_p8 = pnand %p417_p5, %p97_p7  ;;  %s109_s19 = sshll.u32 %s638_s18, 4  ;;  %s705_s19 = int_to_ptr.vmem [resolvable:$true] %s109_s19 }
   0xe   : > { %s717_s21 = sadd.s32 1, %s636_s12   ;;  %s26_s22 = sadd.s32 1, %s632_s11 }
   0xf   : > { %s872_s17 = scalar_select %p701_p8, 1, 0 }
  0x10   : > { %p447_p9 = pneg %p701_p8  ;;  %s23_s23 = ssub.s32 %s636_s12, %s717_s21 }
  0x11   : > { %s508_s26 = scalar_lea.hbm %s865_s1, 128 }
  0x12   : > { %p712_p11 = pnand %p447_p9, %p867_p1  ;;  %p509_p12 = scmp.ne.s32.totalorder %s865_s1, %s508_s26 }
  0x13   : > { %p515_p5 = scmp.lt.u32.totalorder %s508_s26, %s865_s1 }
  0x14   : > { %p510_p13 = pneg %p712_p11 }
  0x16   : > { %p511_p0 = pnand %p510_p13, %p509_p12 }
  0x18   : > { %p512_p3 = pneg %p511_p0 }
  0x1a   : > { %p517_p7 = pnand %p515_p5, %p512_p3 }
  0x1c   : > { %520 = shalt.err (!%p517_p7)
}
  0x1d   : > { %s521_s3 = scalar_lea.vmem %s705_s19, 128  ;;  %p529_p2 = scmp.lt.s32.totalorder %s705_s19, %s705_s19 }
  0x1e   : > { %p522_p9 = scmp.ne.s32.totalorder %s705_s19, %s521_s3  ;;  %p530_p6 = scmp.lt.s32.totalorder %s521_s3, %s521_s3 }
  0x20   : > { %p524_p10 = pnand %p522_p9, %p510_p13  ;;  %p531_p4 = por %p530_p6, %p529_p2 }
  0x22   : > { %p525_p1 = pneg %p524_p10 }
  0x24   : > { %p532_p8 = pnand %p531_p4, %p525_p1 }
  0x26   : > { %535 = shalt.err (!%p532_p8)
}
  0x27   : > { %s639_s4 = smov 64   ;;  %s640_s5 = smov 4  }
  0x28   : > { %450 = dma.hbm_to_vmem [thread:$0]  (!%p712_p11), %s865_s1, 128, %s705_s19, [#allocation6], %s639_s4, %s639_s4, %s640_s5  }
  0x29   : > { %p24_p2 = scmp.eq.s32.totalorder %s23_s23, 0  ;;  %p33_p1 = scmp.ne.s32.totalorder %s632_s11, %s628_s10 }
  0x2a   : > { %p34_p4 = scmp.eq.s32.totalorder %s636_s12, 0  ;;  %p460_p6 = scmp.lt.s32.totalorder %s636_s12, 2 }
  0x2b   : > { %s748_s8 = scalar_select %p24_p2, %s632_s11, %s26_s22  }
  0x2c   : > { %p35_p8 = por %p34_p4, %p33_p1  ;;  %p874_p10 = scmp.eq.s32.totalorder %s682_s13, 1 }
  0x2d   : > { %s123_s18 = sand.u32 1, %s632_s11   ;;  %s437_s24 = sshll.u32 %s636_s12, 7 }
  0x2e   : > { %p752_p12 = por %p874_p10, %p33_p1  ;;  %s420_s25 = sshll.u32 %s123_s18, 3 }
  0x2f   : > { %s761_s27 = scalar_lea.hbm %s864_s0, %s437_s24  ;;  %s127_s19 = scalar_lea.vmem [#allocation2], %s420_s25 }
  0x30   : > { %s135_s22 = sshll.u32 %s127_s19, 4  ;;  %p763_p11 = pnand %p460_p6, %p35_p8  ;;  %s767_s22 = int_to_ptr.vmem [resolvable:$true] %s135_s22 }
  0x31   : > { %s124_s28 = scalar_lea.sflag [#allocation3], %s123_s18  ;;  %s536_s29 = scalar_lea.hbm %s761_s27, 128 }
  0x32   : > { %p537_p13 = scmp.ne.s32.totalorder %s761_s27, %s536_s29  ;;  %p538_p0 = pneg %p763_p11 }
  0x33   : > { %s541_s4 = scalar_lea.hbm %s864_s0, 256  ;;  %p542_p7 = scmp.lt.u32.totalorder %s761_s27, %s864_s0 }
  0x34   : > { %p539_p3 = pnand %p538_p0, %p537_p13  ;;  %p543_p9 = scmp.lt.u32.totalorder %s541_s4, %s536_s29 }
  0x35   : > { %p545_p1 = scmp.lt.u32.totalorder %s536_s29, %s761_s27 }
  0x36   : > { %p540_p5 = pneg %p539_p3  ;;  %p544_p2 = por %p543_p9, %p542_p7 }
  0x38   : > { %p546_p4 = por %p545_p1, %p544_p2 }
  0x3a   : > { %p547_p6 = pnand %p546_p4, %p540_p5 }
  0x3c   : > { %550 = shalt.err (!%p547_p6)
}
  0x3d   : > { %s551_s7 = scalar_lea.vmem %s767_s22, 128  ;;  %s641_s18 = smov [#allocation2]  }
  0x3e   : > { %p552_p8 = scmp.ne.s32.totalorder %s767_s22, %s551_s7  ;;  %s556_s24 = sshll.u32 %s641_s18, 4  ;;  %s557_s24 = int_to_ptr.vmem [resolvable:$false] %s556_s24 }
  0x3f   : > { %s558_s25 = scalar_lea.vmem %s557_s24, 256  ;;  %p559_p3 = scmp.lt.s32.totalorder %s767_s22, %s557_s24 }
  0x40   : > { %p554_p10 = pnand %p552_p8, %p538_p0  ;;  %p560_p7 = scmp.lt.s32.totalorder %s558_s25, %s551_s7 }
  0x42   : > { %p555_p13 = pneg %p554_p10  ;;  %p561_p9 = por %p560_p7, %p559_p3 }
  0x44   : > { %p562_p2 = pnand %p561_p9, %p555_p13 }
  0x46   : > { %565 = shalt.err (!%p562_p2)
}
  0x47   : > { %454 = dma.hbm_to_vmem [thread:$0]  (!%p763_p11), %s761_s27, 128, %s767_s22, %s124_s28  }
  0x48   : > { %p877_p5 = scmp.ne.s32.totalorder %s872_s17, 0 }
  0x49   : > { %s797_s20 = sand.u32 (!%p877_p5), 1, %s628_s10   ;;  %p878_p0 = scmp.ne.s32.totalorder (!%p877_p5), %s870_s15, 0 }
  0x4a   : > { %144 = sbr.rel (%p877_p5) target bundleno = 631 (0x277), region = 28  ;;  %s424_s26 = sshll.u32 (!%p877_p5), %s797_s20, 3 }
  0x4b   : > { %s147_s19 = scalar_lea.sflag (!%p877_p5), [#allocation3], %s797_s20  ;;  %s150_s29 = scalar_lea.vmem (!%p877_p5), [#allocation2], %s424_s26 }
  0x51   : > { %611 = dma.done.wait (%p878_p0), %s147_s19, 128  }
  0x52   : > { %613 = vsyncadd (%p878_p0), %s147_s19, 4294967168  ;;  %p879_p1 = scmp.eq.s32.totalorder %s682_s13, 0 }
  0x54   : > { %615 = dma.done.wait (%p879_p1), [#allocation6], 128   ;;  %p880_p11 = pmov %p879_p1 }
  0x55   : > { %v642_v0 = vmov 0   ;;  %v178_v1 = vld [vmem:[%s150_s29] sm:$0xff]  ;;  %vm193_vm0 = vcmask 1043456   ;;  %v505_v5 = vld [vmem:[#allocation5] sm:$0xff]   ;;  %vm189_vm1 = vcmask 64512   ;;  %s426_s15 = sshll.u32 %s797_s20, 5 }
  0x56   : > { %617 = vsyncadd (%p880_p11), [#allocation6], 4294967168  ;;  %232 = vmatprep.mubr.bf16.mxu0 %v642_v0  ;;  %501 = vset.pattern.permute.xlu0 %v642_v0  ;;  %v429_v2 = vcombine.high %v178_v1, %v178_v1  ;;  %v428_v3 = vcombine.low %v178_v1, %v178_v1  ;;  %s174_s17 = scalar_lea.vmem [#allocation7], %s426_s15  ;;  %s438_s22 = sshll.u32 %s682_s13, 9 }
  0x57   : > { %502 = vset.pattern.permute.xlu1 %v642_v0  ;;  %s333_s27 = sshll.u32 %s174_s17, 4  ;;  %s820_s30 = scalar_lea.hbm %s866_s2, %s438_s22  ;;  %s815_s27 = int_to_ptr.vmem [resolvable:$true] %s333_s27 }
  0x58   : > { %430 = vmatprep.subr.msk.bf16.mxu0 %vm193_vm0, %v429_v2  ;;  %v195_v4 = vsel %vm193_vm0, %v428_v3, 0  ;;  %s320_s13 = scalar_lea.sflag [#allocation4], %s797_s20  ;;  %s566_s3 = scalar_lea.vmem %s815_s27, 512 }
  0x59   : > { %201 = vmatpush1.bf16.msra.mxu0 %v195_v4  ;;  %p567_p4 = scmp.ne.s32.totalorder %s815_s27, %s566_s3  ;;  %s643_s4 = smov [#allocation7]  }
  0x5a   : > { %s570_s5 = sshll.u32 %s643_s4, 4  ;;  %s571_s5 = int_to_ptr.vmem [resolvable:$false] %s570_s5 }
  0x5b   : > { %p568_p6 = pnand %p567_p4, %p752_p12  ;;  %s572_s6 = scalar_lea.vmem %s571_s5, 1024 }
  0x5c   : > { %431 = vmatmul.mubr.msk.bf16.vlgmr.msra.gmra.mrb[0].mxu0 %vm189_vm1, %v505_v5  ;;  %p573_p10 = scmp.lt.s32.totalorder %s815_s27, %s571_s5  ;;  %p574_p13 = scmp.lt.s32.totalorder %s572_s6, %s566_s3 }
  0x5d   : > { %p569_p8 = pneg %p568_p6 }
  0x5e   : > { %p575_p3 = por %p574_p13, %p573_p10 }
  0x60   : > { %p576_p7 = pnand %p575_p3, %p569_p8 }
 0x12f   : > { %v234_v6 = vpop.f32.mrb[0].mxu0 }
 0x130   : > { %v236_v7 = vpop.f32.mrb[1].mxu0  ;;  %v249_v8 = vmul.f32 %v234_v6, %v234_v6 }
 0x131   : > { %v238_v9 = vpop.f32.mrb[2].mxu0  ;;  %v243_v10 = vadd.f32 %v236_v7, %v234_v6  ;;  %v250_v11 = vmul.f32 %v236_v7, %v236_v7 }
 0x132   : > { %v240_v12 = vpop.f32.mrb[3].mxu0  ;;  %v251_v13 = vmul.f32 %v238_v9, %v238_v9 }
 0x133   : > { %v252_v14 = vmul.f32 %v240_v12, %v240_v12  ;;  %244 = vadd.xlane.f32.xlu0 %v243_v10  ;;  %v246_v15 = vadd.f32 %v240_v12, %v238_v9  ;;  %v253_v16 = vadd.f32 %v250_v11, %v249_v8 }
 0x135   : > { %247 = vadd.xlane.f32.xlu1 %v246_v15  ;;  %v256_v17 = vadd.f32 %v252_v14, %v251_v13 }
 0x137   : > { %254 = vadd.xlane.f32.xlu0 %v253_v16 }
 0x139   : > { %257 = vadd.xlane.f32.xlu1 %v256_v17 }
 0x1c0   : > { %v245_v18 = vpop.xlane.xlu0 %244 }
 0x1c1   : > { %v260_v19 = vrot.slane %v245_v18, 4 }
 0x1c2   : > { %v248_v20 = vpop.xlane.xlu1 %247 }
 0x1c3   : > { %v262_v21 = vadd.f32 %v260_v19, %v245_v18  ;;  %v265_v24 = vrot.slane %v248_v20, 4 }
 0x1c4   : > { %v255_v22 = vpop.xlane.xlu0 %254 }
 0x1c5   : > { %v263_v23 = vadd.f32 %v262_v21, %v248_v20  ;;  %v269_v25 = vrot.slane %v255_v22, 4 }
 0x1c6   : > { %v258_v26 = vpop.xlane.xlu1 %257 }
 0x1c7   : > { %v267_v27 = vadd.f32 %v265_v24, %v263_v23  ;;  %v271_v28 = vadd.f32 %v269_v25, %v255_v22  ;;  %v274_v31 = vrot.slane %v258_v26, 4 }
 0x1c9   : > { %v278_v29 = vmul.f32 0.0009765625, %v267_v27  ;;  %v272_v30 = vadd.f32 %v271_v28, %v258_v26 }
 0x1cb   : > { %v276_v32 = vadd.f32 %v274_v31, %v272_v30  ;;  %v286_v33 = vrot.slane %v278_v29, 4  ;;  %v280_v34 = vmul.f32 %v278_v29, %v278_v29 }
 0x1cd   : > { %v279_v35 = vmul.f32 0.0009765625, %v276_v32  ;;  %v288_v36 = vsel %vm193_vm0, %v278_v29, %v286_v33 }
 0x1ce   : > { %295 = vperm.xlu0 %501, %v288_v36  }
 0x1cf   : > { %v281_v37 = vsub.f32 %v279_v35, %v280_v34 }
 0x1d1   : > { %v282_v38 = vmax.f32 %v281_v37, 0.0 }
 0x1d3   : > { %v283_v39 = vadd.f32 1e-05, %v282_v38 }
 0x1d5   : > { %506 = vrsqrt.f32 %v283_v39 }
 0x1df   : > { %v507_v40 = vpop.eup %506 }
 0x1e0   : > { %v290_v41 = vrot.slane %v507_v40, 4 }
 0x1e2   : > { %v292_v42 = vsel %vm193_vm0, %v507_v40, %v290_v41 }
 0x1e3   : > { %304 = vperm.xlu1 %502, %v292_v42  }
 0x24d   : > { %v296_v43 = vpop.permute.xlu0 %295 }
 0x24e   : > { %v298_v44 = vsub.f32 %v234_v6, %v296_v43  ;;  %v299_v45 = vsub.f32 %v236_v7, %v296_v43  ;;  %v300_v46 = vsub.f32 %v238_v9, %v296_v43  ;;  %v301_v47 = vsub.f32 %v240_v12, %v296_v43 }
 0x262   : > { %v305_v48 = vpop.permute.xlu1 %304 }
 0x263   : > { %v307_v49 = vmul.f32 %v305_v48, %v298_v44  ;;  %v308_v50 = vmul.f32 %v305_v48, %v299_v45  ;;  %v309_v51 = vmul.f32 %v305_v48, %v300_v46  ;;  %v310_v52 = vmul.f32 %v305_v48, %v301_v47 }
 0x265   : > { %v311_v53 = vmax.f32 %v307_v49, 0.0  ;;  %v312_v54 = vmax.f32 %v308_v50, 0.0  ;;  %v313_v55 = vmax.f32 %v309_v51, 0.0  ;;  %v314_v56 = vmax.f32 %v310_v52, 0.0 }
 0x267   : > { %315 = vst [vmem:[%s174_s17] sm:$0xff] %v311_v53  ;;  %316 = vst [vmem:[%s174_s17 + $0x8] sm:$0xff] %v312_v54 }
 0x268   : > { %317 = vst [vmem:[%s174_s17 + $0x10] sm:$0xff] %v313_v55  ;;  %318 = vst [vmem:[%s174_s17 + $0x18] sm:$0xff] %v314_v56 }
 0x269   : > { %579 = shalt.err (!%p576_p7)
}
 0x26a   : > { %s580_s7 = scalar_lea.hbm %s820_s30, 512  ;;  %s584_s25 = scalar_lea.hbm %s866_s2, 1024 }
 0x26b   : > { %p581_p9 = scmp.ne.s32.totalorder %s820_s30, %s580_s7  ;;  %p585_p0 = scmp.lt.u32.totalorder %s820_s30, %s866_s2 }
 0x26c   : > { %p586_p1 = scmp.lt.u32.totalorder %s584_s25, %s580_s7  ;;  %p588_p4 = scmp.lt.u32.totalorder %s580_s7, %s820_s30 }
 0x26d   : > { %p582_p2 = pnand %p581_p9, %p752_p12 }
 0x26e   : > { %p587_p11 = por %p586_p1, %p585_p0 }
 0x26f   : > { %p583_p5 = pneg %p582_p2 }
 0x270   : > { %p589_p6 = por %p588_p4, %p587_p11 }
 0x272   : > { %p590_p8 = pnand %p589_p6, %p583_p5 }
 0x274   : > { %593 = shalt.err (!%p590_p8)
}
 0x275   : > { %s644_s29 = smov 256   ;;  %s645_s15 = smov 16  }
 0x276   : > { %445 = dma.vmem_to_hbm [thread:$0]  (%p752_p12), %s815_s27, 512, %s820_s30, %s320_s13, %s644_s29, %s644_s29, %s645_s15  }
 0x277 PF: > { %s348_s17 = sand.u32 1, %s624_s9   ;;  %p881_p10 = scmp.ne.s32.totalorder %s871_s16, 0 }
 0x278   : > { %p882_p13 = scmp.ge.s32.totalorder %s636_s12, 2  ;;  %s349_s22 = scalar_lea.sflag [#allocation4], %s348_s17 }
 0x27a   : > { %p456_p3 = pnand %p882_p13, %p881_p10 }
 0x27c   : > { %619 = dma.done.wait (!%p456_p3), %s349_s22, 512  }
 0x27d   : > { %621 = vsyncadd (!%p456_p3), %s349_s22, 4294966784  ;;  %p16_p7 = scmp.ge.s32.totalorder %s717_s21, 4   ;;  %s883_s9 = smov %s628_s10 }
 0x27e   : > { %s884_s10 = smov %s632_s11  ;;  %s885_s11 = smov %s748_s8 }
 0x27f   : > { %s886_s12 = smov %s717_s21  ;;  %18 = sbr.rel (!%p16_p7) target bundleno = 6 (0x6), region = 77 }
 0x286   :  { %354 = vsyncpa [#allocation3], 1 }
 0x287   :  { %356 = vsyncpa [#allocation3 + $0x1], 1 }
 0x288   :  { %357 = vsyncpa [#allocation6], 1 }
 0x289   :  { %358 = vsyncpa [#allocation4], 1 }
 0x28a   :  { %360 = vsyncpa [#allocation4 + $0x1], 1 }

</bundles_post_ra>
